<compile_context>
chip_gen: v5e
topology: v5e:2x2
jax: 0.10.0
libtpu: 0.0.40
codegen_flags: <defaults>
</compile_context>

<pallas_src>
import jax
import jax.numpy as jnp
from jax.experimental import pallas as pl
from jax.experimental.pallas import tpu as pltpu


def _identity_kernel(x_ref, o_ref):
    # Pass-through of the current lane-dense tile.
    o_ref[...] = x_ref[...]


_LANE_CHOICES = (8192, 4096, 2048, 1024, 512, 256, 128)
# ~2 MiB per block -> ~8 MiB VMEM with double-buffered input + output,
# safe under v7x's 32 MiB default scoped VMEM limit.
_TARGET_TILE_BYTES = 2 * 1024 * 1024


def _pick_lane_width(n: int):
    """Largest lane width (multiple of 128) that evenly divides n elements."""
    for lane in _LANE_CHOICES:
        if n % lane == 0:
            return lane
    return None


def _pick_block_rows(rows: int, lane: int, itemsize: int) -> int:
    """Largest row-chunk that divides `rows`, is a multiple of 8 (or == rows),
    and keeps the tile at or below the target size."""
    if rows * lane * itemsize <= _TARGET_TILE_BYTES:
        return rows
    cap = max(8, _TARGET_TILE_BYTES // (lane * itemsize))
    for cand in range(int(cap), 0, -1):
        if rows % cand == 0 and cand % 8 == 0:
            return cand
    # No suitable even divisor; fall back to one full-array block.
    return rows


def _identity_copy_2d(x2: jax.Array) -> jax.Array:
    rows, lane = x2.shape
    block_rows = _pick_block_rows(rows, lane, x2.dtype.itemsize)
    grid = (rows // block_rows,)
    return pl.pallas_call(
        _identity_kernel,
        out_shape=jax.ShapeDtypeStruct((rows, lane), x2.dtype),
        grid=grid,
        in_specs=[pl.BlockSpec((block_rows, lane), lambda i: (i, 0))],
        out_specs=pl.BlockSpec((block_rows, lane), lambda i: (i, 0)),
        # Identity: alias output onto the input -> no extra HBM buffer/writeback.
        input_output_aliases={0: 0},
        compiler_params=pltpu.CompilerParams(
            dimension_semantics=("parallel",),
        ),
    )(x2)


def policy_forward(x: jax.Array) -> jax.Array:
    """Pallas equivalent of Policy.forward(x) == x.

    Accepts any shape/dtype; the toy test uses (B, C, H, W) float32 (NCHW),
    same as the PyTorch module would receive.
    """
    total = int(x.size)
    lane = _pick_lane_width(total)
    if lane is None:
        # Element count not divisible by 128: fall back to a single
        # full-array block (full-dim exception to the (8,128) rule).
        x2 = x.reshape(1, total)
        y2 = pl.pallas_call(
            _identity_kernel,
            out_shape=jax.ShapeDtypeStruct(x2.shape, x2.dtype),
            input_output_aliases={0: 0},
        )(x2)
        return y2.reshape(x.shape)

    # Lane-dense 2D slab: last dim is a large multiple of 128 so every
    # load/store is a full-width unmasked vld/vst.
    x2 = x.reshape(total // lane, lane)
    y2 = _identity_copy_2d(x2)
    return y2.reshape(x.shape)


if __name__ == "__main__":
    key = jax.random.PRNGKey(0)
    # Small NCHW input consistent with an image-like state tensor.
    x = jax.random.normal(key, (2, 4, 16, 16), dtype=jnp.float32)

    y = policy_forward(x)
    y = jax.block_until_ready(y)

    # Verify identity semantics exactly.
    assert y.shape == x.shape and y.dtype == x.dtype
    assert bool(jnp.all(y == x))

    print("KERNEL_OK")
</pallas_src>

<mosaic_0001>
module attributes {stable_mosaic.version = 11 : i64} {
  func.func @_identity_kernel(%arg0: i32, %arg1: memref<1x2048xf32, #tpu.memory_space<vmem>>, %arg2: memref<1x2048xf32, #tpu.memory_space<vmem>>) attributes {dimension_semantics = [#tpu.dimension_semantics<parallel>], iteration_bounds = array<i64: 1>, scalar_prefetch = 0 : i64, scratch_operands = 0 : i64, tpu.core_type = #tpu.core_type<tc>, window_params = [{transform_indices = @transform_0, window_bounds = array<i64: 1, 2048>}, {transform_indices = @transform_1, window_bounds = array<i64: 1, 2048>}]} {
    %c0 = arith.constant 0 : index
    %c0_0 = arith.constant 0 : index
    %0 = vector.load %arg1[%c0, %c0_0] : memref<1x2048xf32, #tpu.memory_space<vmem>>, vector<1x2048xf32>
    %c0_1 = arith.constant 0 : index
    %c0_2 = arith.constant 0 : index
    %1 = vector.load %arg2[%c0_1, %c0_2] : memref<1x2048xf32, #tpu.memory_space<vmem>>, vector<1x2048xf32>
    tpu.vector_store %arg2[%c0_1, %c0_2], %0 {strides = array<i32>} : memref<1x2048xf32, #tpu.memory_space<vmem>>, vector<1x2048xf32>,
    return
  }
  func.func @transform_0(%arg0: i32) -> (i32, i32) {
    %c0_i32 = arith.constant 0 : i32
    %c0_i32_0 = arith.constant 0 : i32
    return %arg0, %c0_i32 : i32, i32
  }
  func.func @transform_1(%arg0: i32) -> (i32, i32) {
    %c0_i32 = arith.constant 0 : i32
    %c0_i32_0 = arith.constant 0 : i32
    return %arg0, %c0_i32 : i32, i32
  }
}

</mosaic_0001>

<bundles_post_ra>
// kernel: tpu_custom_call.1
= control target key start
LH: loop header
LB: loop body
LE: loop exit
PB: predicated region body
PF: predicated region fallthrough
CT: control target
= control target key end

     0   :  { %6 = vsyncpa [#allocation3], 0  ;;  %s116_s0 = inlined_call_operand.hbm [shape: f32[1,2048], index: 0, kind: input, shape index: {}, may-alias: {0,1}]   ;;  %s117_s1 = inlined_call_operand.hbm [shape: f32[1,2048], index: 1, kind: output, shape index: {}, may-alias: {0,1}]  }
   0x1   :  { %7 = vsyncpa [#allocation4], 0  ;;  %s13_s8 = sshll.u32 %s116_s0, 4  ;;  %s98_s9 = smov [#allocation2]   ;;  %s14_s8 = int_to_ptr.hbm [resolvable:$true] %s13_s8 }
   0x2   :  { %s15_s10 = sshll.u32 %s98_s9, 4  ;;  %s16_s10 = int_to_ptr.vmem [resolvable:$true] %s15_s10 }
   0x3   :  { %18 = dma.hbm_to_vmem [thread:$0]  %s14_s8, 256, %s16_s10, [#allocation3]  }
   0x4   :  { %94 = dma.done.wait [#allocation3], 256  }
   0x5   :  { %95 = vsyncadd [#allocation3], 4294967040  ;;  %s99_s11 = smov [#allocation5]   ;;  %s34_s15 = sshll.u32 %s117_s1, 4  ;;  %v23_v0 = vld [vmem:[#allocation2] sm:$0xff]  ;;  %v24_v1 = vld [vmem:[#allocation2 + $0x8] sm:$0xff]  ;;  %s35_s15 = int_to_ptr.hbm [resolvable:$true] %s34_s15 }
   0x6   :  { %s32_s12 = sshll.u32 %s99_s11, 4  ;;  %25 = vst [vmem:[#allocation5] sm:$0xff] %v23_v0  ;;  %s33_s12 = int_to_ptr.vmem [resolvable:$true] %s32_s12 }
   0x7   :  { %26 = vst [vmem:[#allocation5 + $0x8] sm:$0xff] %v24_v1 }
   0x8   :  { %37 = dma.vmem_to_hbm [thread:$0]  %s33_s12, 256, %s35_s15, [#allocation4]  }
   0x9   :  { %96 = dma.done.wait [#allocation4], 256  }
   0xa   :  { %97 = vsyncadd [#allocation4], 4294967040 }
   0xb   :  { %42 = vsyncpa [#allocation3], 1 }
   0xc   :  { %43 = vsyncpa [#allocation4], 1 }

</bundles_post_ra>
